<compile_context>
chip_gen: v7x
topology: tpu7x:2x2x1
jax: 0.10.0
libtpu: 0.0.40
codegen_flags: <defaults>
</compile_context>

<pallas_src>
import jax
import jax.numpy as jnp
from jax.experimental import pallas as pl
from jax.experimental.pallas import tpu as pltpu

_LANE = 128


def _round_up(x, m):
    return (x + m - 1) // m * m


def _make_fused_mlp_kernel(n_feats, n_layers):
    """Kernel body for `n_feats` inputs and `n_layers` MLP layers.

    Ref order: feats[0..F), w0_chunks[0..F), s0, b0, (w_l, s_l, b_l) for
    l = 1..L-1, out.
    """

    def kernel(*refs):
        feat_refs = refs[:n_feats]
        w0_refs = refs[n_feats:2 * n_feats]
        s0_ref = refs[2 * n_feats]
        b0_ref = refs[2 * n_feats + 1]
        tail = refs[2 * n_feats + 2:-1]          # (w, s, b) triples, layers 1..
        out_ref = refs[-1]

        # ---- layer 0: concat fused as a split-K matmul into one accumulator.
        acc = jnp.dot(feat_refs[0][...], w0_refs[0][...],
                      preferred_element_type=jnp.float32)
        for f_ref, w_ref in zip(feat_refs[1:], w0_refs[1:]):
            acc = acc + jnp.dot(f_ref[...], w_ref[...],
                                preferred_element_type=jnp.float32)
        # Folded-BN epilogue in f32: relu(acc*scale + bias).
        x = jnp.maximum(acc * s0_ref[...] + b0_ref[...], 0.0)

        # ---- layers 1..L-1: activation stays resident in the kernel ---------
        for l in range(1, n_layers):
            w_ref = tail[3 * (l - 1)]
            s_ref = tail[3 * (l - 1) + 1]
            b_ref = tail[3 * (l - 1) + 2]
            acc = jnp.dot(x.astype(w_ref.dtype), w_ref[...],
                          preferred_element_type=jnp.float32)
            x = jnp.maximum(acc * s_ref[...] + b_ref[...], 0.0)

        out_ref[...] = x.astype(out_ref.dtype)

    return kernel


def cat_aggregation_forward(feats_list, params, *, tm=512,
                            compute_dtype=jnp.bfloat16,
                            out_dtype=None,
                            pad_out_lanes=True,
                            min_grid_steps=4):
    """forward(feats_list): cat along last dim, then fused Linear+BN+ReLU stack.

    feats_list: list of arrays, shape (..., C_i), identical leading dims.
    params: list of (w, scale, bias) per layer; w is (C_in, C_out),
            scale/bias are (1, C_out) folded-BN (eval) terms, all f32.
    compute_dtype: matmul operand dtype (bf16 default — memory-bound kernel,
            bf16-native MXU on all generations); accumulation + epilogue are
            always f32.
    out_dtype: output dtype (None -> dtype of feats_list[0]); bf16 halves
            write-side HBM traffic.
    pad_out_lanes: pad final output channels to a multiple of 128 lanes for an
            unmasked lane-dense store (padding sliced off afterwards).  Set
            False to write the true n_out and skip the post-kernel slice copy.
    """
    if not params:
        # mlps=None path of the module: concat only (plain JAX glue).
        return jnp.concatenate(feats_list, axis=-1)

    if out_dtype is None:
        out_dtype = feats_list[0].dtype

    lead_shape = feats_list[0].shape[:-1]
    M = 1
    for d in lead_shape:
        M *= d

    # apply1d flatten
    feats2d = [f.reshape(M, f.shape[-1]) for f in feats_list]
    c_ins = [f.shape[-1] for f in feats2d]
    n_layers = len(params)

    w_list = [w for (w, _, _) in params]
    s_list = [s for (_, s, _) in params]
    b_list = [b for (_, _, b) in params]

    # Optional lane-dense final store: pad last layer's outputs to 128 lanes.
    n_out = w_list[-1].shape[1]
    n_out_store = _round_up(n_out, _LANE) if pad_out_lanes else n_out
    if n_out_store != n_out:
        pad_c = n_out_store - n_out
        w_list[-1] = jnp.pad(w_list[-1], ((0, 0), (0, pad_c)))
        s_list[-1] = jnp.pad(s_list[-1], ((0, 0), (0, pad_c)))
        b_list[-1] = jnp.pad(b_list[-1], ((0, 0), (0, pad_c)))

    # Split layer-0 weight row-wise per input feature (fuses the concat).
    w0_chunks = []
    off = 0
    for c in c_ins:
        w0_chunks.append(w_list[0][off:off + c, :])
        off += c

    # Row tiling: no divisibility requirement (rows zero-padded, sliced back).
    # bf16 packs 16 rows per sublane tile -> round tiles to 16 in that case.
    sublane = 16 if jnp.dtype(compute_dtype) == jnp.dtype(jnp.bfloat16) else 8
    # Cap the tile so the grid has >= min_grid_steps steps (megacore split on
    # v7x, real pipeline overlap) while never exceeding the requested tm.
    tm_cap = _round_up(pl.cdiv(M, max(1, min_grid_steps)), sublane)
    tm_eff = max(sublane, min(tm, tm_cap))
    m_pad = _round_up(M, tm_eff)
    if m_pad != M:
        feats2d = [jnp.pad(f, ((0, m_pad - M), (0, 0))) for f in feats2d]

    # Operand dtypes: matmul operands in compute_dtype; scale/bias stay f32.
    feats2d = [f.astype(compute_dtype) for f in feats2d]
    w0_chunks = [w.astype(compute_dtype) for w in w0_chunks]
    ws_rest = [w.astype(compute_dtype) for w in w_list[1:]]
    s_list = [s.astype(jnp.float32) for s in s_list]
    b_list = [b.astype(jnp.float32) for b in b_list]

    grid = (m_pad // tm_eff,)
    resident = dict(pipeline_mode=pl.Buffered(1))   # grid-invariant operands

    inputs, in_specs = [], []
    for f in feats2d:
        inputs.append(f)
        in_specs.append(pl.BlockSpec((tm_eff, f.shape[-1]), lambda i: (i, 0)))
    for w in w0_chunks:
        inputs.append(w)
        in_specs.append(pl.BlockSpec(w.shape, lambda i: (0, 0), **resident))
    inputs += [s_list[0], b_list[0]]
    in_specs.append(pl.BlockSpec(s_list[0].shape, lambda i: (0, 0), **resident))
    in_specs.append(pl.BlockSpec(b_list[0].shape, lambda i: (0, 0), **resident))
    for w, s, b in zip(ws_rest, s_list[1:], b_list[1:]):
        inputs += [w, s, b]
        in_specs.append(pl.BlockSpec(w.shape, lambda i: (0, 0), **resident))
        in_specs.append(pl.BlockSpec(s.shape, lambda i: (0, 0), **resident))
        in_specs.append(pl.BlockSpec(b.shape, lambda i: (0, 0), **resident))

    kernel = _make_fused_mlp_kernel(len(feats2d), n_layers)

    # Rough VMEM working set; set an explicit limit only if it would exceed the
    # v5e default scoped budget (16 MiB).  Double-buffered row-tiled operands,
    # single-buffered residents, plus f32 activation headroom.
    op_b = jnp.dtype(compute_dtype).itemsize
    out_b = jnp.dtype(out_dtype).itemsize
    est = sum(2 * tm_eff * c * op_b for c in c_ins)
    est += 2 * tm_eff * n_out_store * out_b
    est += sum(int(w.size) * op_b for w in w0_chunks + ws_rest)
    est += sum(int(a.size) * 4 for a in s_list + b_list)
    max_width = max([n_out_store] + [w.shape[1] for w in w_list])
    est += 2 * tm_eff * max_width * 4
    vmem_limit = None
    if est > 12 * 1024 * 1024:
        vmem_limit = min(int(2 * est), 64 * 1024 * 1024)

    out = pl.pallas_call(
        kernel,
        out_shape=jax.ShapeDtypeStruct((m_pad, n_out_store), out_dtype),
        grid_spec=pltpu.PrefetchScalarGridSpec(
            num_scalar_prefetch=0,
            grid=grid,
            in_specs=in_specs,
            out_specs=pl.BlockSpec((tm_eff, n_out_store), lambda i: (i, 0)),
        ),
        compiler_params=pltpu.CompilerParams(
            dimension_semantics=("parallel",),
            vmem_limit_bytes=vmem_limit),
    )(*inputs)

    if m_pad != M or n_out_store != n_out:
        out = out[:M, :n_out]
    return out.reshape(*lead_shape, n_out)


def make_cat_aggregation_params(input_channels, mlps, key, eps=1e-5):
    """Deterministic synthetic params for Linear(no bias)+BN layers (eval mode)."""
    dims = [sum(input_channels)] + list(mlps)
    params = []
    for k in range(len(dims) - 1):
        c_in, c_out = dims[k], dims[k + 1]
        key, kw, kg, kb = jax.random.split(key, 4)
        # torch Linear weight is (out, in); store transposed (in, out).
        w = (jax.random.normal(kw, (c_in, c_out), jnp.float32)
             * (1.0 / jnp.sqrt(c_in)))
        gamma = 1.0 + 0.1 * jax.random.normal(kg, (c_out,), jnp.float32)
        beta = 0.1 * jax.random.normal(kb, (c_out,), jnp.float32)
        running_mean = jnp.zeros((c_out,), jnp.float32)
        running_var = jnp.ones((c_out,), jnp.float32)
        # Fold BN (eval): y = z*scale + bias
        scale = gamma / jnp.sqrt(running_var + eps)
        bias = beta - running_mean * scale
        params.append((w, scale.reshape(1, -1), bias.reshape(1, -1)))
    return params


def _reference_forward(feats_list, params):
    x = jnp.concatenate(feats_list, axis=-1)
    if not params:
        return x
    lead_shape = x.shape[:-1]
    x = x.reshape(-1, x.shape[-1])
    for w, scale, bias in params:
        x = jnp.maximum(x @ w * scale + bias, 0.0)
    return x.reshape(*lead_shape, x.shape[-1])


if __name__ == "__main__":
    key = jax.random.PRNGKey(0)
    k1, k2, kp = jax.random.split(key, 3)

    # Two feature sources: (B, N, C1), (B, N, C2) -> concatenated C = 128.
    # N chosen so B*N is NOT a multiple of the row tile (exercises padding and
    # the >= min_grid_steps tiling cap).
    B, Npts, C1, C2 = 2, 100, 64, 64
    feats_list = [
        jax.random.normal(k1, (B, Npts, C1), jnp.float32),
        jax.random.normal(k2, (B, Npts, C2), jnp.float32),
    ]
    mlps = [128, 64]  # aggregation_cfg.mlps (last layer output < 128 lanes)
    params = make_cat_aggregation_params([C1, C2], mlps, kp)

    ref = _reference_forward(feats_list, params)

    # (1) f32 operands — exact vs reference.
    out_f32 = cat_aggregation_forward(feats_list, params,
                                      compute_dtype=jnp.float32)
    out_f32 = jax.block_until_ready(out_f32)
    assert out_f32.shape == (B, Npts, mlps[-1])
    assert jnp.allclose(out_f32, ref, atol=1e-4, rtol=1e-4)

    # (2) Default fast path: bf16 operands, f32 accumulate + epilogue, f32 out.
    out_def = jax.block_until_ready(cat_aggregation_forward(feats_list, params))
    assert out_def.shape == (B, Npts, mlps[-1])
    assert jnp.allclose(out_def, ref, atol=1e-1, rtol=1e-1)

    # (3) bf16 output + unpadded final channels (masked store, no post-slice
    #     copy): write-side HBM traffic minimized.
    out_bf16 = cat_aggregation_forward(feats_list, params,
                                       out_dtype=jnp.bfloat16,
                                       pad_out_lanes=False)
    out_bf16 = jax.block_until_ready(out_bf16)
    assert out_bf16.dtype == jnp.bfloat16
    assert out_bf16.shape == (B, Npts, mlps[-1])
    assert jnp.allclose(out_bf16.astype(jnp.float32), ref, atol=2e-1, rtol=2e-1)

    # (4) mlps=None path of the module: concat only.
    out_cat = jax.block_until_ready(cat_aggregation_forward(feats_list, []))
    assert out_cat.shape == (B, Npts, C1 + C2)

    print("KERNEL_OK")
</pallas_src>

<mosaic_0001>
module attributes {stable_mosaic.version = 11 : i64} {
  func.func @kernel(%arg0: i32, %arg1: memref<56x64xf32, #tpu.memory_space<vmem>>, %arg2: memref<56x64xf32, #tpu.memory_space<vmem>>, %arg3: memref<64x128xf32, #tpu.memory_space<vmem>>, %arg4: memref<64x128xf32, #tpu.memory_space<vmem>>, %arg5: memref<1x128xf32, #tpu.memory_space<vmem>>, %arg6: memref<1x128xf32, #tpu.memory_space<vmem>>, %arg7: memref<128x128xf32, #tpu.memory_space<vmem>>, %arg8: memref<1x128xf32, #tpu.memory_space<vmem>>, %arg9: memref<1x128xf32, #tpu.memory_space<vmem>>, %arg10: memref<56x128xf32, #tpu.memory_space<vmem>>) attributes {dimension_semantics = [#tpu.dimension_semantics<parallel>], iteration_bounds = array<i64: 4>, scalar_prefetch = 0 : i64, scratch_operands = 0 : i64, tpu.core_type = #tpu.core_type<tc>, window_params = [{transform_indices = @transform_0, window_bounds = array<i64: 56, 64>}, {transform_indices = @transform_1, window_bounds = array<i64: 56, 64>}, {pipeline_mode = #tpu.pipeline_mode<synchronous>, transform_indices = @transform_2, window_bounds = array<i64: 64, 128>}, {pipeline_mode = #tpu.pipeline_mode<synchronous>, transform_indices = @transform_3, window_bounds = array<i64: 64, 128>}, {pipeline_mode = #tpu.pipeline_mode<synchronous>, transform_indices = @transform_4, window_bounds = array<i64: 1, 128>}, {pipeline_mode = #tpu.pipeline_mode<synchronous>, transform_indices = @transform_5, window_bounds = array<i64: 1, 128>}, {pipeline_mode = #tpu.pipeline_mode<synchronous>, transform_indices = @transform_6, window_bounds = array<i64: 128, 128>}, {pipeline_mode = #tpu.pipeline_mode<synchronous>, transform_indices = @transform_7, window_bounds = array<i64: 1, 128>}, {pipeline_mode = #tpu.pipeline_mode<synchronous>, transform_indices = @transform_8, window_bounds = array<i64: 1, 128>}, {transform_indices = @transform_9, window_bounds = array<i64: 56, 128>}]} {
    %c0 = arith.constant 0 : index
    %c0_0 = arith.constant 0 : index
    %0 = vector.load %arg1[%c0, %c0_0] : memref<56x64xf32, #tpu.memory_space<vmem>>, vector<56x64xf32>
    %c0_1 = arith.constant 0 : index
    %c0_2 = arith.constant 0 : index
    %1 = vector.load %arg3[%c0_1, %c0_2] : memref<64x128xf32, #tpu.memory_space<vmem>>, vector<64x128xf32>
    %cst = arith.constant dense<0.000000e+00> : vector<56x128xf32>
    %2 = tpu.matmul %0, %1, %cst {dimension_numbers = #tpu.dot_dimension_numbers<[1], [0], [0], [1], [0, 0, 1, 1], [], []>} : vector<56x64xf32>, vector<64x128xf32>, vector<56x128xf32> -> vector<56x128xf32>
    %c0_3 = arith.constant 0 : index
    %c0_4 = arith.constant 0 : index
    %3 = vector.load %arg2[%c0_3, %c0_4] : memref<56x64xf32, #tpu.memory_space<vmem>>, vector<56x64xf32>
    %c0_5 = arith.constant 0 : index
    %c0_6 = arith.constant 0 : index
    %4 = vector.load %arg4[%c0_5, %c0_6] : memref<64x128xf32, #tpu.memory_space<vmem>>, vector<64x128xf32>
    %cst_7 = arith.constant dense<0.000000e+00> : vector<56x128xf32>
    %5 = tpu.matmul %3, %4, %cst_7 {dimension_numbers = #tpu.dot_dimension_numbers<[1], [0], [0], [1], [0, 0, 1, 1], [], []>} : vector<56x64xf32>, vector<64x128xf32>, vector<56x128xf32> -> vector<56x128xf32>
    %6 = arith.addf %2, %5 : vector<56x128xf32>
    %c0_8 = arith.constant 0 : index
    %c0_9 = arith.constant 0 : index
    %7 = vector.load %arg5[%c0_8, %c0_9] : memref<1x128xf32, #tpu.memory_space<vmem>>, vector<1x128xf32>
    %8 = vector.broadcast %7 : vector<1x128xf32> to vector<56x128xf32>
    %9 = arith.mulf %6, %8 : vector<56x128xf32>
    %c0_10 = arith.constant 0 : index
    %c0_11 = arith.constant 0 : index
    %10 = vector.load %arg6[%c0_10, %c0_11] : memref<1x128xf32, #tpu.memory_space<vmem>>, vector<1x128xf32>
    %11 = vector.broadcast %10 : vector<1x128xf32> to vector<56x128xf32>
    %12 = arith.addf %9, %11 : vector<56x128xf32>
    %cst_12 = arith.constant 0.000000e+00 : f32
    %13 = vector.broadcast %cst_12 : f32 to vector<56x128xf32>
    %14 = arith.maximumf %12, %13 : vector<56x128xf32>
    %c0_13 = arith.constant 0 : index
    %c0_14 = arith.constant 0 : index
    %15 = vector.load %arg7[%c0_13, %c0_14] : memref<128x128xf32, #tpu.memory_space<vmem>>, vector<128x128xf32>
    %cst_15 = arith.constant dense<0.000000e+00> : vector<56x128xf32>
    %16 = tpu.matmul %14, %15, %cst_15 {dimension_numbers = #tpu.dot_dimension_numbers<[1], [0], [0], [1], [0, 0, 1, 1], [], []>} : vector<56x128xf32>, vector<128x128xf32>, vector<56x128xf32> -> vector<56x128xf32>
    %c0_16 = arith.constant 0 : index
    %c0_17 = arith.constant 0 : index
    %17 = vector.load %arg8[%c0_16, %c0_17] : memref<1x128xf32, #tpu.memory_space<vmem>>, vector<1x128xf32>
    %18 = vector.broadcast %17 : vector<1x128xf32> to vector<56x128xf32>
    %19 = arith.mulf %16, %18 : vector<56x128xf32>
    %c0_18 = arith.constant 0 : index
    %c0_19 = arith.constant 0 : index
    %20 = vector.load %arg9[%c0_18, %c0_19] : memref<1x128xf32, #tpu.memory_space<vmem>>, vector<1x128xf32>
    %21 = vector.broadcast %20 : vector<1x128xf32> to vector<56x128xf32>
    %22 = arith.addf %19, %21 : vector<56x128xf32>
    %cst_20 = arith.constant 0.000000e+00 : f32
    %23 = vector.broadcast %cst_20 : f32 to vector<56x128xf32>
    %24 = arith.maximumf %22, %23 : vector<56x128xf32>
    %c0_21 = arith.constant 0 : index
    %c0_22 = arith.constant 0 : index
    %25 = vector.load %arg10[%c0_21, %c0_22] : memref<56x128xf32, #tpu.memory_space<vmem>>, vector<56x128xf32>
    tpu.vector_store %arg10[%c0_21, %c0_22], %24 {strides = array<i32>} : memref<56x128xf32, #tpu.memory_space<vmem>>, vector<56x128xf32>,
    return
  }
  func.func @transform_0(%arg0: i32) -> (i32, i32) {
    %c0_i32 = arith.constant 0 : i32
    %c0_i32_0 = arith.constant 0 : i32
    return %arg0, %c0_i32 : i32, i32
  }
  func.func @transform_1(%arg0: i32) -> (i32, i32) {
    %c0_i32 = arith.constant 0 : i32
    %c0_i32_0 = arith.constant 0 : i32
    return %arg0, %c0_i32 : i32, i32
  }
  func.func @transform_2(%arg0: i32) -> (i32, i32) {
    %c0_i32 = arith.constant 0 : i32
    %c0_i32_0 = arith.constant 0 : i32
    %c0_i32_1 = arith.constant 0 : i32
    return %c0_i32, %c0_i32_0 : i32, i32
  }
  func.func @transform_3(%arg0: i32) -> (i32, i32) {
    %c0_i32 = arith.constant 0 : i32
    %c0_i32_0 = arith.constant 0 : i32
    %c0_i32_1 = arith.constant 0 : i32
    return %c0_i32, %c0_i32_0 : i32, i32
  }
  func.func @transform_4(%arg0: i32) -> (i32, i32) {
    %c0_i32 = arith.constant 0 : i32
    %c0_i32_0 = arith.constant 0 : i32
    %c0_i32_1 = arith.constant 0 : i32
    return %c0_i32, %c0_i32_0 : i32, i32
  }
  func.func @transform_5(%arg0: i32) -> (i32, i32) {
    %c0_i32 = arith.constant 0 : i32
    %c0_i32_0 = arith.constant 0 : i32
    %c0_i32_1 = arith.constant 0 : i32
    return %c0_i32, %c0_i32_0 : i32, i32
  }
  func.func @transform_6(%arg0: i32) -> (i32, i32) {
    %c0_i32 = arith.constant 0 : i32
    %c0_i32_0 = arith.constant 0 : i32
    %c0_i32_1 = arith.constant 0 : i32
    return %c0_i32, %c0_i32_0 : i32, i32
  }
  func.func @transform_7(%arg0: i32) -> (i32, i32) {
    %c0_i32 = arith.constant 0 : i32
    %c0_i32_0 = arith.constant 0 : i32
    %c0_i32_1 = arith.constant 0 : i32
    return %c0_i32, %c0_i32_0 : i32, i32
  }
  func.func @transform_8(%arg0: i32) -> (i32, i32) {
    %c0_i32 = arith.constant 0 : i32
    %c0_i32_0 = arith.constant 0 : i32
    %c0_i32_1 = arith.constant 0 : i32
    return %c0_i32, %c0_i32_0 : i32, i32
  }
  func.func @transform_9(%arg0: i32) -> (i32, i32) {
    %c0_i32 = arith.constant 0 : i32
    %c0_i32_0 = arith.constant 0 : i32
    return %arg0, %c0_i32 : i32, i32
  }
}

</mosaic_0001>

<bundles_post_ra>
// kernel: tpu_custom_call.1
= control target key start
LH: loop header
LB: loop body
LE: loop exit
PB: predicated region body
PF: predicated region fallthrough
CT: control target
= control target key end

     0   :  { %14 = vsyncpa [#allocation3], 0  ;;  %s1660_s0 = inlined_call_operand.vmem [shape: f32[224,64], index: 0, kind: input, shape index: {}]   ;;  %s1661_s1 = inlined_call_operand.vmem [shape: f32[224,64], index: 1, kind: input, shape index: {}]   ;;  %s1662_s2 = inlined_call_operand.vmem [shape: f32[64,128], index: 2, kind: input, shape index: {}]   ;;  %s1663_s3 = inlined_call_operand.vmem [shape: f32[64,128], index: 3, kind: input, shape index: {}]   ;;  %s1664_s4 = inlined_call_operand.vmem [shape: f32[1,128], index: 4, kind: input, shape index: {}]   ;;  %s1665_s5 = inlined_call_operand.vmem [shape: f32[1,128], index: 5, kind: input, shape index: {}]   ;;  %s1666_s6 = inlined_call_operand.vmem [shape: f32[128,128], index: 6, kind: input, shape index: {}]   ;;  %s1667_s7 = inlined_call_operand.vmem [shape: f32[1,128], index: 7, kind: input, shape index: {}]   ;;  %s1668_s8 = inlined_call_operand.vmem [shape: f32[1,128], index: 8, kind: input, shape index: {}]   ;;  %s1669_s9 = inlined_call_operand.hbm [shape: f32[224,128], index: 9, kind: output, shape index: {}]  }
   0x1   :  { %16 = vsyncpa [#allocation3 + $0x1], 0  ;;  %s1345_s30 = smov 0   ;;  %s1347_s10 = smov 0  }
   0x2   :  { %s1349_s11 = smov 0   ;;  %s1351_s12 = smov 0  }
   0x3 LB: > { %s1366_s13 = sadd.s32 4294967295, %s1287_s12   ;;  %s910_s14 = sadd.s32 4294967294, %s1287_s12   ;;  %s1287_s12 = sphi %s1351_s12, %s1675_s12   ;;  %s1283_s11 = sphi %s1349_s11, %s1674_s11   ;;  %s1279_s10 = sphi %s1347_s10, %s1673_s10   ;;  %s1275_s30 = sphi %s1345_s30, %s1672_s30  }
   0x4   : > { %s1370_s15 = sadd.s32 1, %s1287_s12   ;;  %s228_s16 = sadd.s32 1, %s1283_s11 }
   0x5   : > { %s225_s17 = ssub.s32 %s1287_s12, %s1370_s15  ;;  %p238_p0 = scmp.ne.s32.totalorder %s1283_s11, %s1279_s10 }
   0x6   : > { %p226_p1 = scmp.eq.s32.totalorder %s225_s17, 0  ;;  %p239_p2 = scmp.eq.s32.totalorder %s1366_s13, 3 }
   0x7   : > { %p244_p3 = scmp.ne.s32.totalorder %s1279_s10, %s1275_s30  ;;  %p245_p4 = scmp.eq.s32.totalorder %s910_s14, 3 }
   0x8   : > { %s1381_s18 = scalar_select %p226_p1, %s1283_s11, %s228_s16  }
   0x9   : > { %p1383_p5 = por %p239_p2, %p238_p0  ;;  %p1387_p6 = por %p245_p4, %p244_p3 }
   0xa   : > { %p913_p7 = scmp.ge.s32.totalorder %s1287_s12, 1  ;;  %p302_p8 = scmp.lt.s32.totalorder %s1287_s12, 5 }
   0xc   : > { %p303_p9 = pnand %p913_p7, %p302_p8 }
   0xd   : > { %v378_v0 = vld [vmem:[%s1663_s3] sm:$0xff] (!%p303_p9)  ;;  %v379_v1 = vld [vmem:[%s1663_s3 + $0x8] sm:$0xff] (!%p303_p9)  ;;  %v380_v2 = vld [vmem:[%s1663_s3 + $0x10] sm:$0xff] (!%p303_p9)  ;;  %v1289_v3 = vmov (!%p303_p9), 0.0|0.0   ;;  %vm1290_vm0 = vmmov (!%p303_p9), 0   ;;  %v1291_v6 = vmov (!%p303_p9), 0.0  }
   0xe   : > { %306 = sbr.rel (%p303_p9) target bundleno = 534 (0x216), region = 56  ;;  %1118 = vmatprep.subr.bf16.mxu0 (!%p303_p9), %v1289_v3  ;;  %v1119_v4 = vpack.c.bf16 (!%p303_p9), %v379_v1, %v378_v0  ;;  %v381_v5 = vld [vmem:[%s1663_s3 + $0x18] sm:$0xff] (!%p303_p9)  ;;  %1007 = vmatprep.mubr.msk.f32.mxu0 (!%p303_p9), %vm1290_vm0, %v1291_v6  ;;  %v382_v8 = vld [vmem:[%s1663_s3 + $0x20] sm:$0xff] (!%p303_p9)  ;;  %v383_v9 = vld [vmem:[%s1663_s3 + $0x28] sm:$0xff] (!%p303_p9)  ;;  %vm386_vm1 = vcmask (!%p303_p9), 523264  }
   0xf   : > { %s343_s29 = smul.u32 (!%p303_p9), 7, %s1366_s13  ;;  %1142 = vmatprep.subr.bf16.mxu1 (!%p303_p9), %v1289_v3  ;;  %1097 = vmatprep.mubr.msk.f32.mxu1 (!%p303_p9), %vm1290_vm0, %v1291_v6  ;;  %v1122_v7 = vpack.c.bf16 (!%p303_p9), %v381_v5, %v380_v2  ;;  %v664_v10 = vld [vmem:[%s1666_s6] sm:$0xff] (!%p303_p9)  ;;  %v665_v11 = vld [vmem:[%s1666_s6 + $0x8] sm:$0xff] (!%p303_p9)  ;;  %v666_v13 = vld [vmem:[%s1666_s6 + $0x10] sm:$0xff] (!%p303_p9)  ;;  %v1125_v15 = vpack.c.bf16 (!%p303_p9), %v383_v9, %v382_v8 }
  0x10   : > { %1120 = vmatpush3.bf16.msra.mxu0 (!%p303_p9), %v1119_v4  ;;  %v1143_v12 = vpack.c.bf16 (!%p303_p9), %v665_v11, %v664_v10  ;;  %v667_v14 = vld [vmem:[%s1666_s6 + $0x18] sm:$0xff] (!%p303_p9)  ;;  %v384_v16 = vld [vmem:[%s1663_s3 + $0x30] sm:$0xff] (!%p303_p9)  ;;  %v668_v19 = vld [vmem:[%s1666_s6 + $0x20] sm:$0xff] (!%p303_p9)  ;;  %s937_s14 = smul.u32 (!%p303_p9), 896, %s1366_s13 }
  0x11   : > { %p344_p10 = scmp.lt.s32.totalorder (!%p303_p9), %s343_s29, 27  ;;  %1121 = vmatprep.subr.bf16.mxu0 (!%p303_p9), %v1289_v3  ;;  %v385_v17 = vld [vmem:[%s1663_s3 + $0x38] sm:$0xff] (!%p303_p9)  ;;  %v1146_v18 = vpack.c.bf16 (!%p303_p9), %v667_v14, %v666_v13  ;;  %v669_v20 = vld [vmem:[%s1666_s6 + $0x28] sm:$0xff] (!%p303_p9)  ;;  %v363_v22 = vld [vmem:[%s1662_s2] sm:$0xff] (!%p303_p9) }
  0x12   : > { %1144 = vmatpush3.bf16.msra.mxu1 (!%p303_p9), %v1143_v12  ;;  %v1128_v21 = vpack.c.bf16 (!%p303_p9), %v385_v17, %v384_v16  ;;  %v364_v23 = vld [vmem:[%s1662_s2 + $0x8] sm:$0xff] (!%p303_p9)  ;;  %v1149_v24 = vpack.c.bf16 (!%p303_p9), %v669_v20, %v668_v19  ;;  %v670_v25 = vld [vmem:[%s1666_s6 + $0x30] sm:$0xff] (!%p303_p9)  ;;  %v671_v26 = vld [vmem:[%s1666_s6 + $0x38] sm:$0xff] (!%p303_p9) }
  0x13   : > { %1145 = vmatprep.subr.bf16.mxu1 (!%p303_p9), %v1289_v3  ;;  %v1131_v28 = vpack.c.bf16 (!%p303_p9), %v364_v23, %v363_v22  ;;  %v365_v29 = vld [vmem:[%s1662_s2 + $0x10] sm:$0xff] (!%p303_p9)  ;;  %v366_v30 = vld [vmem:[%s1662_s2 + $0x18] sm:$0xff] (!%p303_p9)  ;;  %v1152_v31 = vpack.c.bf16 (!%p303_p9), %v671_v26, %v670_v25  ;;  %v672_v32 = vld [vmem:[%s1666_s6 + $0x40] sm:$0xff] (!%p303_p9) }
  0x14   : > { %1123 = vmatpush3.bf16.msra.mxu0 (!%p303_p9), %v1122_v7  ;;  %v673_v33 = vld [vmem:[%s1666_s6 + $0x48] sm:$0xff] (!%p303_p9)  ;;  %v1134_v35 = vpack.c.bf16 (!%p303_p9), %v366_v30, %v365_v29  ;;  %v367_v36 = vld [vmem:[%s1662_s2 + $0x20] sm:$0xff] (!%p303_p9)  ;;  %v674_v39 = vld [vmem:[%s1666_s6 + $0x50] sm:$0xff] (!%p303_p9) }
  0x15   : > { %s1677_s29 = smov (!%p344_p10, %s343_s29), 27  ;;  %1124 = vmatprep.subr.bf16.mxu0 %v1289_v3  ;;  %v368_v37 = vld [vmem:[%s1662_s2 + $0x28] sm:$0xff]  ;;  %v1155_v38 = vpack.c.bf16 %v673_v33, %v672_v32  ;;  %v675_v40 = vld [vmem:[%s1666_s6 + $0x58] sm:$0xff]  ;;  %v369_v43 = vld [vmem:[%s1662_s2 + $0x30] sm:$0xff] }
  0x16   : > { %s914_s23 = sshll.u32 %s1677_s29, 3  ;;  %1147 = vmatpush3.bf16.msra.mxu1 %v1146_v18  ;;  %v1137_v42 = vpack.c.bf16 %v368_v37, %v367_v36  ;;  %v370_v44 = vld [vmem:[%s1662_s2 + $0x38] sm:$0xff]  ;;  %v1158_v45 = vpack.c.bf16 %v675_v40, %v674_v39  ;;  %v676_v58 = vld [vmem:[%s1666_s6 + $0x60] sm:$0xff]  ;;  %v677_v59 = vld [vmem:[%s1666_s6 + $0x68] sm:$0xff]  ;;  %s340_s29 = sand.u32 1, %s1279_s10  }
  0x17   : > { %s1454_s16 = scalar_lea.vmem %s1661_s1, %s914_s23  ;;  %1148 = vmatprep.subr.bf16.mxu1 %v1289_v3  ;;  %v1140_v47 = vpack.c.bf16 %v370_v44, %v369_v43  ;;  %s347_s24 = scalar_lea.vmem %s1660_s0, %s914_s23  ;;  %v1161_v60 = vpack.c.bf16 %v677_v59, %v676_v58  ;;  %v678_v61 = vld [vmem:[%s1666_s6 + $0x70] sm:$0xff]  ;;  %v679_v62 = vld [vmem:[%s1666_s6 + $0x78] sm:$0xff]  ;;  %v930_v0 = vld [vmem:[%s1664_s4] ss:$0 sm:$0xff] }
  0x18   : > { %1126 = vmatpush3.bf16.msra.mxu0 %v1125_v15  ;;  %v371_v27 = vld [vmem:[%s1454_s16] sm:$0xff]  ;;  %v372_v34 = vld [vmem:[%s1454_s16 + $0x8] sm:$0xff]  ;;  %v373_v41 = vld [vmem:[%s1454_s16 + $0x10] sm:$0xff]  ;;  %v1164_v63 = vpack.c.bf16 %v679_v62, %v678_v61  ;;  %s1180_s25 = smul.u32 56, %s340_s29  ;;  %s1619_s13 = scalar_lea.sflag [#allocation3], %s340_s29 }
  0x19   : > { %1127 = vmatprep.subr.bf16.mxu0 %v1289_v3  ;;  %v374_v46 = vld [vmem:[%s1454_s16 + $0x18] sm:$0xff]  ;;  %v375_v48 = vld [vmem:[%s1454_s16 + $0x20] sm:$0xff]  ;;  %v376_v49 = vld [vmem:[%s1454_s16 + $0x28] sm:$0xff] }
  0x1a   : > { %1150 = vmatpush3.bf16.msra.mxu1 %v1149_v24  ;;  %v377_v50 = vld [vmem:[%s1454_s16 + $0x30] sm:$0xff]  ;;  %v356_v51 = vld [vmem:[%s347_s24] sm:$0xff]  ;;  %v357_v52 = vld [vmem:[%s347_s24 + $0x8] sm:$0xff]  ;;  %s1599_s28 = scalar_lea.vmem [#allocation2], %s1180_s25  ;;  %s1292_s16 = smov [#allocation2]  }
  0x1b   : > { %1151 = vmatprep.subr.bf16.mxu1 %v1289_v3  ;;  %v358_v53 = vld [vmem:[%s347_s24 + $0x10] sm:$0xff]  ;;  %v359_v54 = vld [vmem:[%s347_s24 + $0x18] sm:$0xff]  ;;  %v360_v55 = vld [vmem:[%s347_s24 + $0x20] sm:$0xff]  ;;  %s836_s17 = sshll.u32 %s1599_s28, 4  ;;  %s1229_s25 = sshll.u32 %s1292_s16, 4  ;;  %s1614_s17 = int_to_ptr.vmem [resolvable:$true] %s836_s17  ;;  %s1230_s25 = int_to_ptr.vmem [resolvable:$false] %s1229_s25 }
  0x1c   : > { %1129 = vmatpush3.bf16.msra.mxu0 %v1128_v21  ;;  %v361_v56 = vld [vmem:[%s347_s24 + $0x28] sm:$0xff]  ;;  %v362_v57 = vld [vmem:[%s347_s24 + $0x30] sm:$0xff]  ;;  %v931_v2 = vld [vmem:[%s1665_s5] ss:$0 sm:$0xff]  ;;  %s1612_s24 = scalar_lea.hbm %s1669_s9, %s937_s14  ;;  %s1225_s23 = scalar_lea.vmem %s1614_s17, 896 }
  0x1d   : > { %1130 = vmatprep.subr.bf16.mxu0 %v1289_v3  ;;  %v933_v40 = vld [vmem:[%s1668_s8] ss:$0 sm:$0xff]  ;;  %p1226_p11 = scmp.ne.s32.totalorder %s1614_s17, %s1225_s23  ;;  %s1231_s26 = scalar_lea.vmem %s1230_s25, 1792 }
  0x1e   : > { %1153 = vmatpush3.bf16.msra.mxu1 %v1152_v31  ;;  %p1232_p0 = scmp.lt.s32.totalorder %s1614_s17, %s1230_s25  ;;  %p1233_p1 = scmp.lt.s32.totalorder %s1231_s26, %s1225_s23 }
  0x1f   : > { %1008 = vmatmul.mubr.msk.f32.vlgmr.msra.gmra.mrb[0].mxu0 %vm386_vm1, %v371_v27  ;;  %1154 = vmatprep.subr.bf16.mxu1 %v1289_v3  ;;  %p1227_p12 = pnand %p1226_p11, %p1383_p5 }
  0x20   : > { %1132 = vmatpush3.bf16.msra.mxu0 %v1131_v28  ;;  %1010 = vmatprep.mubr.msk.f32.mxu0 %vm1290_vm0, %v1291_v6  ;;  %p1234_p2 = por %p1233_p1, %p1232_p0 }
  0x21   : > { %1133 = vmatprep.subr.bf16.mxu0 %v1289_v3  ;;  %p1228_p13 = pneg %p1227_p12 }
  0x22   : > { %1156 = vmatpush3.bf16.msra.mxu1 %v1155_v38  ;;  %v932_v38 = vld [vmem:[%s1667_s7] ss:$0 sm:$0xff] }
  0x23   : > { %1011 = vmatmul.mubr.msk.f32.gmra.mrb[2].mxu0 %vm386_vm1, %v372_v34  ;;  %1157 = vmatprep.subr.bf16.mxu1 %v1289_v3  ;;  %p1235_p3 = pnand %p1234_p2, %p1228_p13 }
  0x24   : > { %1013 = vmatprep.mubr.msk.f32.mxu0 %vm1290_vm0, %v1291_v6  ;;  %1135 = vmatpush3.bf16.msra.mxu0 %v1134_v35 }
  0x25   : > { %1136 = vmatprep.subr.bf16.mxu0 %v1289_v3 }
  0x26   : > { %1159 = vmatpush3.bf16.msra.mxu1 %v1158_v45 }
  0x27   : > { %1014 = vmatmul.mubr.msk.f32.gmra.mrb[4].mxu0 %vm386_vm1, %v373_v41  ;;  %1160 = vmatprep.subr.bf16.mxu1 %v1289_v3 }
  0x28   : > { %1016 = vmatprep.mubr.msk.f32.mxu0 %vm1290_vm0, %v1291_v6  ;;  %1138 = vmatpush3.bf16.msra.mxu0 %v1137_v42 }
  0x29   : > { %1139 = vmatprep.subr.bf16.mxu0 %v1289_v3 }
  0x2a   : > { %1162 = vmatpush3.bf16.msra.mxu1 %v1161_v60 }
  0x2b   : > { %1017 = vmatmul.mubr.msk.f32.gmra.mrb[6].mxu0 %vm386_vm1, %v374_v46  ;;  %1163 = vmatprep.subr.bf16.mxu1 %v1289_v3 }
  0x2c   : > { %1019 = vmatprep.mubr.msk.f32.mxu0 %vm1290_vm0, %v1291_v6  ;;  %1141 = vmatpush3.bf16.msra.mxu0 %v1140_v47 }
  0x2e   : > { %1165 = vmatpush3.bf16.msra.mxu1 %v1164_v63 }
  0x2f   : > { %1020 = vmatmul.mubr.msk.f32.gmra.mrb[8].mxu0 %vm386_vm1, %v375_v48 }
  0x30   : > { %1022 = vmatprep.mubr.msk.f32.mxu0 %vm1290_vm0, %v1291_v6 }
  0x33   : > { %1023 = vmatmul.mubr.msk.f32.gmra.mrb[10].mxu0 %vm386_vm1, %v376_v49 }
  0x34   : > { %1025 = vmatprep.mubr.msk.f32.mxu0 %vm1290_vm0, %v1291_v6 }
  0x37   : > { %1026 = vmatmul.mubr.msk.f32.gmra.mrb[12].mxu0 %vm386_vm1, %v377_v50 }
  0x38   : > { %1044 = vmatprep.mubr.msk.f32.mxu0 %vm1290_vm0, %v1291_v6 }
  0x3b   : > { %1045 = vmatmul.mubr.msk.f32.vlgmr.msra.gmra.mrb[0].mxu0 %vm386_vm1, %v356_v51 }
  0x3c   : > { %1047 = vmatprep.mubr.msk.f32.mxu0 %vm1290_vm0, %v1291_v6 }
  0x3f   : > { %1048 = vmatmul.mubr.msk.f32.gmra.mrb[2].mxu0 %vm386_vm1, %v357_v52 }
  0x40   : > { %1050 = vmatprep.mubr.msk.f32.mxu0 %vm1290_vm0, %v1291_v6 }
  0x43   : > { %1051 = vmatmul.mubr.msk.f32.gmra.mrb[4].mxu0 %vm386_vm1, %v358_v53 }
  0x44   : > { %1053 = vmatprep.mubr.msk.f32.mxu0 %vm1290_vm0, %v1291_v6 }
  0x47   : > { %1054 = vmatmul.mubr.msk.f32.gmra.mrb[6].mxu0 %vm386_vm1, %v359_v54 }
  0x48   : > { %1056 = vmatprep.mubr.msk.f32.mxu0 %vm1290_vm0, %v1291_v6 }
  0x4b   : > { %1057 = vmatmul.mubr.msk.f32.gmra.mrb[8].mxu0 %vm386_vm1, %v360_v55 }
  0x4c   : > { %1059 = vmatprep.mubr.msk.f32.mxu0 %vm1290_vm0, %v1291_v6 }
  0x4f   : > { %1060 = vmatmul.mubr.msk.f32.gmra.mrb[10].mxu0 %vm386_vm1, %v361_v56 }
  0x50   : > { %1062 = vmatprep.mubr.msk.f32.mxu0 %vm1290_vm0, %v1291_v6 }
  0x53   : > { %1063 = vmatmul.mubr.msk.f32.gmra.mrb[12].mxu0 %vm386_vm1, %v362_v57 }
 0x10e   : > { %v595_v1 = vpop.f32.mrb[0].mxu0 }
 0x10f   : > { %v636_v3 = vmul.f32 %v930_v0, %v595_v1  ;;  %v1046_v4 = vpop.f32.mrb[1].mxu0 }
 0x111   : > { %v650_v5 = vadd.f32 %v931_v2, %v636_v3 }
 0x112   : > { %v600_v7 = vpop.f32.mrb[2].mxu0 }
 0x113   : > { %v657_v8 = vmax.f32 %v650_v5, 0.0  ;;  %v637_v9 = vmul.f32 %v930_v0, %v600_v7  ;;  %v1049_v10 = vpop.f32.mrb[3].mxu0 }
 0x115   : > { %v651_v11 = vadd.f32 %v931_v2, %v637_v9  ;;  %1098 = vmatmul.mubr.f32.vlgmr.msra.gmra.mrb[0].mxu1 %v657_v8 }
 0x116   : > { %v605_v12 = vpop.f32.mrb[4].mxu0  ;;  %1100 = vmatprep.mubr.msk.f32.mxu1 %vm1290_vm0, %v1291_v6 }
 0x117   : > { %v658_v13 = vmax.f32 %v651_v11, 0.0  ;;  %v638_v14 = vmul.f32 %v930_v0, %v605_v12  ;;  %v1052_v15 = vpop.f32.mrb[5].mxu0 }
 0x119   : > { %v652_v16 = vadd.f32 %v931_v2, %v638_v14  ;;  %1101 = vmatmul.mubr.f32.gmra.mrb[2].mxu1 %v658_v13 }
 0x11a   : > { %v610_v17 = vpop.f32.mrb[6].mxu0  ;;  %1103 = vmatprep.mubr.msk.f32.mxu1 %vm1290_vm0, %v1291_v6 }
 0x11b   : > { %v659_v18 = vmax.f32 %v652_v16, 0.0  ;;  %v639_v19 = vmul.f32 %v930_v0, %v610_v17  ;;  %v1055_v20 = vpop.f32.mrb[7].mxu0 }
 0x11d   : > { %v653_v21 = vadd.f32 %v931_v2, %v639_v19  ;;  %1104 = vmatmul.mubr.f32.gmra.mrb[4].mxu1 %v659_v18 }
 0x11e   : > { %v615_v22 = vpop.f32.mrb[8].mxu0  ;;  %1106 = vmatprep.mubr.msk.f32.mxu1 %vm1290_vm0, %v1291_v6 }
 0x11f   : > { %v660_v23 = vmax.f32 %v653_v21, 0.0  ;;  %v640_v24 = vmul.f32 %v930_v0, %v615_v22  ;;  %v1058_v25 = vpop.f32.mrb[9].mxu0 }
 0x121   : > { %v654_v26 = vadd.f32 %v931_v2, %v640_v24  ;;  %1107 = vmatmul.mubr.f32.gmra.mrb[6].mxu1 %v660_v23 }
 0x122   : > { %v620_v27 = vpop.f32.mrb[10].mxu0  ;;  %1109 = vmatprep.mubr.msk.f32.mxu1 %vm1290_vm0, %v1291_v6 }
 0x123   : > { %v661_v28 = vmax.f32 %v654_v26, 0.0  ;;  %v641_v29 = vmul.f32 %v930_v0, %v620_v27  ;;  %v1061_v30 = vpop.f32.mrb[11].mxu0 }
 0x125   : > { %v655_v31 = vadd.f32 %v931_v2, %v641_v29  ;;  %1110 = vmatmul.mubr.f32.gmra.mrb[8].mxu1 %v661_v28 }
 0x126   : > { %v625_v32 = vpop.f32.mrb[12].mxu0  ;;  %1112 = vmatprep.mubr.msk.f32.mxu1 %vm1290_vm0, %v1291_v6 }
 0x127   : > { %v662_v33 = vmax.f32 %v655_v31, 0.0  ;;  %v642_v34 = vmul.f32 %v930_v0, %v625_v32  ;;  %v1064_v35 = vpop.f32.mrb[13].mxu0 }
 0x129   : > { %v656_v36 = vadd.f32 %v931_v2, %v642_v34  ;;  %1113 = vmatmul.mubr.f32.gmra.mrb[10].mxu1 %v662_v33 }
 0x12a   : > { %1115 = vmatprep.mubr.msk.f32.mxu1 %vm1290_vm0, %v1291_v6 }
 0x12b   : > { %v663_v37 = vmax.f32 %v656_v36, 0.0 }
 0x12d   : > { %1116 = vmatmul.mubr.f32.gmra.mrb[12].mxu1 %v663_v37 }
 0x1e8   : > { %v746_v39 = vpop.f32.mrb[0].mxu1 }
 0x1e9   : > { %v787_v41 = vmul.f32 %v932_v38, %v746_v39  ;;  %v1099_v42 = vpop.f32.mrb[1].mxu1 }
 0x1eb   : > { %v801_v43 = vadd.f32 %v933_v40, %v787_v41 }
 0x1ec   : > { %v751_v44 = vpop.f32.mrb[2].mxu1 }
 0x1ed   : > { %v808_v45 = vmax.f32 %v801_v43, 0.0  ;;  %v788_v6 = vmul.f32 %v932_v38, %v751_v44  ;;  %v1102_v46 = vpop.f32.mrb[3].mxu1 }
 0x1ef   : > { %815 = vst [vmem:[%s1599_s28] sm:$0xff] %v808_v45  ;;  %v802_v47 = vadd.f32 %v933_v40, %v788_v6 }
 0x1f0   : > { %v756_v48 = vpop.f32.mrb[4].mxu1 }
 0x1f1   : > { %v809_v49 = vmax.f32 %v802_v47, 0.0  ;;  %v789_v50 = vmul.f32 %v932_v38, %v756_v48  ;;  %v1105_v51 = vpop.f32.mrb[5].mxu1 }
 0x1f3   : > { %816 = vst [vmem:[%s1599_s28 + $0x8] sm:$0xff] %v809_v49  ;;  %v803_v52 = vadd.f32 %v933_v40, %v789_v50 }
 0x1f4   : > { %v761_v53 = vpop.f32.mrb[6].mxu1 }
 0x1f5   : > { %v810_v54 = vmax.f32 %v803_v52, 0.0  ;;  %v790_v55 = vmul.f32 %v932_v38, %v761_v53  ;;  %v1108_v56 = vpop.f32.mrb[7].mxu1 }
 0x1f7   : > { %817 = vst [vmem:[%s1599_s28 + $0x10] sm:$0xff] %v810_v54  ;;  %v804_v57 = vadd.f32 %v933_v40, %v790_v55 }
 0x1f8   : > { %v766_v58 = vpop.f32.mrb[8].mxu1 }
 0x1f9   : > { %v811_v59 = vmax.f32 %v804_v57, 0.0  ;;  %v791_v60 = vmul.f32 %v932_v38, %v766_v58  ;;  %v1111_v61 = vpop.f32.mrb[9].mxu1 }
 0x1fb   : > { %818 = vst [vmem:[%s1599_s28 + $0x18] sm:$0xff] %v811_v59  ;;  %v805_v62 = vadd.f32 %v933_v40, %v791_v60 }
 0x1fc   : > { %v771_v63 = vpop.f32.mrb[10].mxu1 }
 0x1fd   : > { %v812_v0 = vmax.f32 %v805_v62, 0.0  ;;  %v792_v1 = vmul.f32 %v932_v38, %v771_v63  ;;  %v1114_v2 = vpop.f32.mrb[11].mxu1 }
 0x1ff   : > { %819 = vst [vmem:[%s1599_s28 + $0x20] sm:$0xff] %v812_v0  ;;  %v806_v3 = vadd.f32 %v933_v40, %v792_v1 }
 0x200   : > { %v776_v4 = vpop.f32.mrb[12].mxu1 }
 0x201   : > { %v813_v5 = vmax.f32 %v806_v3, 0.0  ;;  %v793_v7 = vmul.f32 %v932_v38, %v776_v4  ;;  %v1117_v8 = vpop.f32.mrb[13].mxu1 }
 0x203   : > { %820 = vst [vmem:[%s1599_s28 + $0x28] sm:$0xff] %v813_v5  ;;  %v807_v9 = vadd.f32 %v933_v40, %v793_v7 }
 0x205   : > { %v814_v10 = vmax.f32 %v807_v9, 0.0 }
 0x207   : > { %821 = vst [vmem:[%s1599_s28 + $0x30] sm:$0xff] %v814_v10 }
 0x208   : > { %1238 = shalt.err (!%p1235_p3)
}
 0x209   : > { %s1239_s29 = scalar_lea.hbm %s1612_s24, 896  ;;  %s1243_s14 = scalar_lea.hbm %s1669_s9, 3584 }
 0x20a   : > { %p1240_p4 = scmp.ne.s32.totalorder %s1612_s24, %s1239_s29  ;;  %p1244_p9 = scmp.lt.u32.totalorder %s1612_s24, %s1669_s9 }
 0x20b   : > { %p1245_p10 = scmp.lt.u32.totalorder %s1243_s14, %s1239_s29  ;;  %p1247_p12 = scmp.lt.u32.totalorder %s1239_s29, %s1612_s24 }
 0x20c   : > { %p1241_p7 = pnand %p1240_p4, %p1383_p5 }
 0x20d   : > { %p1246_p11 = por %p1245_p10, %p1244_p9 }
 0x20e   : > { %p1242_p8 = pneg %p1241_p7 }
 0x20f   : > { %p1248_p13 = por %p1247_p12, %p1246_p11 }
 0x211   : > { %p1249_p0 = pnand %p1248_p13, %p1242_p8 }
 0x213   : > { %1252 = shalt.err (!%p1249_p0)
}
 0x214   : > { %s1293_s23 = smov 128   ;;  %s1294_s16 = smov 8  }
 0x215   : > { %1181 = dma.vmem_to_hbm [thread:$0]  (%p1383_p5), %s1614_s17, 896, %s1612_s24, %s1619_s13, %s1293_s23, %s1293_s23, %s1294_s16  }
 0x216 PF: > { %p1187_p1 = scmp.ge.s32.totalorder %s1287_s12, 2  ;;  %s851_s25 = sand.u32 1, %s1275_s30  }
 0x217   : > { %s852_s26 = scalar_lea.sflag [#allocation3], %s851_s25 }
 0x218   : > { %p1184_p2 = pnand %p1187_p1, %p1387_p6 }
 0x21a   : > { %1270 = dma.done.wait (!%p1184_p2), %s852_s26, 896  }
 0x21b   : > { %1272 = vsyncadd (!%p1184_p2), %s852_s26, 4294966400  ;;  %p19_p3 = scmp.ge.s32.totalorder %s1370_s15, 6   ;;  %s1672_s30 = smov %s1279_s10 }
 0x21c   : > { %s1673_s10 = smov %s1283_s11  ;;  %s1674_s11 = smov %s1381_s18 }
 0x21d   : > { %s1675_s12 = smov %s1370_s15  ;;  %21 = sbr.rel (!%p19_p3) target bundleno = 3 (0x3), region = 94 }
 0x224   :  { %857 = vsyncpa [#allocation3], 1 }
 0x225   :  { %859 = vsyncpa [#allocation3 + $0x1], 1 }

</bundles_post_ra>
